<compile_context>
chip_gen: v7x
topology: tpu7x:2x2x1
jax: 0.10.0
libtpu: 0.0.40
codegen_flags: <defaults>
</compile_context>

<pallas_src>
import functools

import jax
import jax.numpy as jnp
from jax.experimental import pallas as pl
from jax.experimental.pallas import tpu as pltpu


_LANES = 128
_SUBLANES = 8


def _round_up(x, m):
    return (x + m - 1) // m * m


# --------------------------------------------------------------------------
# Kernel 1: feature-distillation partial sums (tiled, pipelined)
#   acc[0] += fold(diff^2 * mask)              -> fg_sum
#   acc[1] += fold(diff^2 * (1 - onehot))      -> bg_sum
#   acc[2] += fold(mask)                       -> mask_sum
#   acc[3] += fold(1 - onehot)                 -> bg_cnt (pad-corrected later)
# where fold() reduces a (block_rows, 128) tile to (8, 128) with VPU adds.
# --------------------------------------------------------------------------
def _feat_kd_kernel(st_ref, tc_ref, mask_ref, acc_ref):
    # acc_ref: (4, 8, 128) f32, resident across the "arbitrary" axis.
    @pl.when(pl.program_id(1) == 0)
    def _init():
        acc_ref[...] = jnp.zeros_like(acc_ref)

    st = st_ref[...].astype(jnp.float32)
    tc = tc_ref[...].astype(jnp.float32)
    m = mask_ref[...].astype(jnp.float32)

    diff = st - tc
    diff2 = diff * diff
    onehot = jnp.where(m > 0.0, 1.0, 0.0).astype(jnp.float32)
    bg = 1.0 - onehot

    rows = diff2.shape[0]

    def fold(x):
        # (rows, 128) -> (rows//8, 8, 128) -> elementwise adds -> (8, 128)
        return jnp.sum(x.reshape(rows // _SUBLANES, _SUBLANES, _LANES), axis=0)

    acc_ref[0] += fold(diff2 * m)
    acc_ref[1] += fold(diff2 * bg)
    acc_ref[2] += fold(m)
    acc_ref[3] += fold(bg)


def _feat_kd_sums(st_feat, tc_feat, feat_mask, *, block_rows=2048, num_cores=2):
    """Returns (fg_sum, bg_sum, mask_sum, bg_cnt) as f32 scalars."""
    total = int(st_feat.size)

    rows = _round_up(pl.cdiv(total, _LANES), _SUBLANES)
    block_rows = _round_up(min(block_rows, rows), _SUBLANES)
    steps_per_core = pl.cdiv(rows, num_cores * block_rows)
    rows_padded = num_cores * steps_per_core * block_rows
    pad_elems = rows_padded * _LANES - total

    def prep(x):
        # Keep native dtype (bf16 inputs stay bf16 on the HBM side); the
        # kernel upcasts per tile.
        flat = x.reshape(-1)
        if pad_elems:
            flat = jnp.pad(flat, (0, pad_elems))
        return flat.reshape(rows_padded, _LANES)

    st2, tc2, m2 = prep(st_feat), prep(tc_feat), prep(feat_mask)

    bytes_accessed = sum(int(a.size) * a.dtype.itemsize for a in (st2, tc2, m2))
    in_spec = pl.BlockSpec((block_rows, _LANES),
                           lambda c, s: (c * steps_per_core + s, 0))

    partial = pl.pallas_call(
        _feat_kd_kernel,
        out_shape=jax.ShapeDtypeStruct(
            (num_cores, 4, _SUBLANES, _LANES), jnp.float32),
        grid_spec=pltpu.PrefetchScalarGridSpec(
            num_scalar_prefetch=0,
            grid=(num_cores, steps_per_core),
            in_specs=[in_spec, in_spec, in_spec],
            out_specs=pl.BlockSpec((None, 4, _SUBLANES, _LANES),
                                   lambda c, s: (c, 0, 0, 0)),
        ),
        compiler_params=pltpu.CompilerParams(
            dimension_semantics=("parallel", "arbitrary"),
            vmem_limit_bytes=32 * 1024 * 1024),
        cost_estimate=pl.CostEstimate(
            flops=8 * rows_padded * _LANES,
            transcendentals=0,
            bytes_accessed=bytes_accessed),
    )(st2, tc2, m2)

    sums = jnp.sum(partial, axis=(0, 2, 3))  # (4,)
    fg_sum, bg_sum, mask_sum, bg_cnt = sums[0], sums[1], sums[2], sums[3]
    # Padded elements have mask == 0 and st == tc: only bg_cnt is inflated.
    bg_cnt = bg_cnt - jnp.float32(pad_elems)
    return fg_sum, bg_sum, mask_sum, bg_cnt


# --------------------------------------------------------------------------
# Kernel 2: KL-divergence sum for logits distillation
#   q     = softmax(tc / T, axis=1)
#   log_p = log_softmax(st / T, axis=1)
#   out   = sum( q * (log q - log_p) )     (F.kl_div elementwise, summed)
# Class dim is lane-padded to 128 with a big negative constant so padded
# lanes contribute exactly 0; identically-padded rows contribute exactly 0.
# --------------------------------------------------------------------------
def _kl_div_kernel(st_ref, tc_ref, out_ref, *, inv_t):
    s = st_ref[...].astype(jnp.float32) * inv_t
    t = tc_ref[...].astype(jnp.float32) * inv_t

    # log_softmax of student logits (row-wise)
    s_max = jnp.max(s, axis=1, keepdims=True)
    s_shift = s - s_max
    s_lse = jnp.log(jnp.sum(jnp.exp(s_shift), axis=1, keepdims=True))
    log_p = s_shift - s_lse

    # softmax / log_softmax of teacher logits (row-wise), without per-element
    # divides: sum_j q_j (log q_j - log p_j)
    #        = (1 / t_sum) * sum_j t_exp_j (log q_j - log p_j)
    t_max = jnp.max(t, axis=1, keepdims=True)
    t_shift = t - t_max
    t_exp = jnp.exp(t_shift)
    t_sum = jnp.sum(t_exp, axis=1, keepdims=True)
    log_q = t_shift - jnp.log(t_sum)

    row = jnp.sum(t_exp * (log_q - log_p), axis=1, keepdims=True)
    row = row * pl.reciprocal(t_sum, approx=True)
    out_ref[0, 0] = jnp.sum(row)


def _kl_div_sum(st_pred, tc_pred, temperature):
    n, c = st_pred.shape
    n_pad = _round_up(max(n, 1), _SUBLANES) - n
    c_pad = _round_up(max(c, 1), _LANES) - c
    if n_pad or c_pad:
        pad_val = -1e9  # exp(pad/T - max) underflows to exactly 0
        st_pred = jnp.pad(st_pred, ((0, n_pad), (0, c_pad)),
                          constant_values=pad_val)
        tc_pred = jnp.pad(tc_pred, ((0, n_pad), (0, c_pad)),
                          constant_values=pad_val)

    rows, cols = st_pred.shape
    # TODO(synk): tile over N with an "arbitrary" grid axis (same accumulator
    # pattern as the feature kernel) if the proposal count gets large.
    kernel = functools.partial(_kl_div_kernel, inv_t=1.0 / float(temperature))
    out = pl.pallas_call(
        kernel,
        out_shape=jax.ShapeDtypeStruct((1, 1), jnp.float32),
        in_specs=[pl.BlockSpec(memory_space=pltpu.VMEM)] * 2,
        out_specs=pl.BlockSpec(memory_space=pltpu.SMEM),
        compiler_params=pltpu.CompilerParams(
            vmem_limit_bytes=32 * 1024 * 1024),
        cost_estimate=pl.CostEstimate(
            flops=12 * rows * cols,
            transcendentals=2 * rows * cols,
            bytes_accessed=2 * rows * cols * st_pred.dtype.itemsize),
    )(st_pred, tc_pred)
    return out[0, 0]


# --------------------------------------------------------------------------
# KDLoss forward (p_str='decouple', soft_weights=None path)
# --------------------------------------------------------------------------
def kd_loss_forward(kd_param, st_feat, tc_feat, feat_mask,
                    st_pred, tc_pred, kd_t=15.0):
    """Mirrors KDLoss.forward with p_str='decouple', soft_weights=None.

    st_feat / tc_feat / feat_mask are lists (only element [0] is used),
    st_pred / tc_pred are (N, num_classes) logits,
    kd_param is a nested list of python-float scalars.
    """
    # --- feature distillation (decouple: fg / bg split) ---
    fg_sum, bg_sum, mask_sum, bg_cnt = _feat_kd_sums(
        st_feat[0], tc_feat[0], feat_mask[0])

    norms = jnp.maximum(1.0, mask_sum * 2.0)
    feat_loss = fg_sum / norms * kd_param[2][1] * kd_param[0][0]

    norms_back = jnp.maximum(1.0, bg_cnt * 2.0)
    feat_bg_loss = bg_sum / norms_back * kd_param[2][0] * kd_param[0][0]

    # --- prediction distillation (KL div, reduction='mean') ---
    n, c = st_pred.shape
    kl_sum = _kl_div_sum(st_pred, tc_pred, kd_t)
    kl_mean = kl_sum / float(n * c)        # 'mean' divides by ORIGINAL numel
    cls_kd_tmp = kl_mean * kd_t * kd_t * kd_param[1][0]
    # NOTE: the PyTorch module multiplies by kd_param[1][0] a second time.
    cls_kd_loss = cls_kd_tmp * kd_param[1][0]

    return {'feat': feat_loss, 'feat_bg': feat_bg_loss, 'pred': cls_kd_loss}


if __name__ == "__main__":
    key = jax.random.PRNGKey(0)
    k1, k2, k3, k4, k5 = jax.random.split(key, 5)

    # Small NCHW feature maps (single pyramid level, as the module uses [0]).
    B, C, H, W = 2, 4, 16, 16
    st_feat = [jax.random.normal(k1, (B, C, H, W), dtype=jnp.float32)]
    tc_feat = [jax.random.normal(k2, (B, C, H, W), dtype=jnp.float32)]

    # Soft foreground mask: ~half the locations are positive, rest are zero.
    raw_mask = jax.random.uniform(k3, (B, C, H, W), dtype=jnp.float32)
    feat_mask = [jnp.where(raw_mask > 0.5, raw_mask, 0.0)]

    # Classification logits (N, num_classes + 1).
    N, NCLS = 8, 16
    st_pred = jax.random.normal(k4, (N, NCLS), dtype=jnp.float32)
    tc_pred = jax.random.normal(k5, (N, NCLS), dtype=jnp.float32)

    # Deterministic "kd_param" scalars (synthetic — no checkpoint load).
    kd_param = [[1.0], [0.5], [0.3, 0.7]]
    kd_t = 15.0  # from __init__(kd_t=15)

    out = kd_loss_forward(kd_param, st_feat, tc_feat, feat_mask,
                          st_pred, tc_pred, kd_t=kd_t)
    jax.block_until_ready(out)

    # TODO(synk): soft_weights branch (per-sample weighted KL) not exercised;
    # the default soft_weights=None path is implemented.
    print("KERNEL_OK")
</pallas_src>

<mosaic_0001>
module attributes {stable_mosaic.version = 11 : i64} {
  func.func @_feat_kd_kernel(%arg0: i32, %arg1: i32, %arg2: memref<16x128xf32, #tpu.memory_space<vmem>>, %arg3: memref<16x128xf32, #tpu.memory_space<vmem>>, %arg4: memref<16x128xf32, #tpu.memory_space<vmem>>, %arg5: memref<1x4x8x128xf32, #tpu.memory_space<vmem>>) attributes {dimension_semantics = [#tpu.dimension_semantics<parallel>, #tpu.dimension_semantics<arbitrary>], iteration_bounds = array<i64: 2, 1>, scalar_prefetch = 0 : i64, scratch_operands = 0 : i64, tpu.core_type = #tpu.core_type<tc>, window_params = [{transform_indices = @transform_0, window_bounds = array<i64: 16, 128>}, {transform_indices = @transform_1, window_bounds = array<i64: 16, 128>}, {transform_indices = @transform_2, window_bounds = array<i64: 16, 128>}, {transform_indices = @transform_3, window_bounds = array<i64: 1, 4, 8, 128>}]} {
    %c0_i32 = arith.constant 0 : i32
    %0 = arith.cmpi eq, %arg1, %c0_i32 : i32
    %1 = arith.extui %0 : i1 to i32
    %c0_i32_0 = arith.constant 0 : i32
    %2 = arith.cmpi ne, %1, %c0_i32_0 : i32
    scf.if %2 {
      %cst_42 = arith.constant 0.000000e+00 : f32
      %49 = vector.broadcast %cst_42 : f32 to vector<4x8x128xf32>
      %c0_43 = arith.constant 0 : index
      %c0_44 = arith.constant 0 : index
      %c0_45 = arith.constant 0 : index
      %c0_46 = arith.constant 0 : index
      %50 = vector.load %arg5[%c0_43, %c0_44, %c0_45, %c0_46] : memref<1x4x8x128xf32, #tpu.memory_space<vmem>>, vector<1x4x8x128xf32>
      %51 = vector.shape_cast %50 : vector<1x4x8x128xf32> to vector<4x8x128xf32>
      %52 = vector.shape_cast %49 : vector<4x8x128xf32> to vector<1x4x8x128xf32>
      tpu.vector_store %arg5[%c0_43, %c0_44, %c0_45, %c0_46], %52 {strides = array<i32>} : memref<1x4x8x128xf32, #tpu.memory_space<vmem>>, vector<1x4x8x128xf32>,
    } else {
    }
    %c0 = arith.constant 0 : index
    %c0_1 = arith.constant 0 : index
    %3 = vector.load %arg2[%c0, %c0_1] : memref<16x128xf32, #tpu.memory_space<vmem>>, vector<16x128xf32>
    %c0_2 = arith.constant 0 : index
    %c0_3 = arith.constant 0 : index
    %4 = vector.load %arg3[%c0_2, %c0_3] : memref<16x128xf32, #tpu.memory_space<vmem>>, vector<16x128xf32>
    %c0_4 = arith.constant 0 : index
    %c0_5 = arith.constant 0 : index
    %5 = vector.load %arg4[%c0_4, %c0_5] : memref<16x128xf32, #tpu.memory_space<vmem>>, vector<16x128xf32>
    %6 = arith.subf %3, %4 : vector<16x128xf32>
    %7 = arith.mulf %6, %6 : vector<16x128xf32>
    %cst = arith.constant 0.000000e+00 : f32
    %8 = vector.broadcast %cst : f32 to vector<16x128xf32>
    %9 = arith.cmpf ogt, %5, %8 : vector<16x128xf32>
    %cst_6 = arith.constant 1.000000e+00 : f32
    %cst_7 = arith.constant 0.000000e+00 : f32
    %10 = vector.broadcast %cst_6 : f32 to vector<16x128xf32>
    %11 = vector.broadcast %cst_7 : f32 to vector<16x128xf32>
    %12 = arith.select %9, %10, %11 : vector<16x128xi1>, vector<16x128xf32>
    %cst_8 = arith.constant 1.000000e+00 : f32
    %13 = vector.broadcast %cst_8 : f32 to vector<16x128xf32>
    %14 = arith.subf %13, %12 : vector<16x128xf32>
    %c0_9 = arith.constant 0 : index
    %c0_10 = arith.constant 0 : index
    %c0_11 = arith.constant 0 : index
    %c0_12 = arith.constant 0 : index
    %15 = vector.load %arg5[%c0_9, %c0_10, %c0_11, %c0_12] : memref<1x4x8x128xf32, #tpu.memory_space<vmem>>, vector<1x1x8x128xf32>
    %16 = vector.shape_cast %15 : vector<1x1x8x128xf32> to vector<8x128xf32>
    %17 = arith.mulf %7, %5 : vector<16x128xf32>
    %18 = vector.shape_cast %17 : vector<16x128xf32> to vector<2x8x128xf32>
    %cst_13 = arith.constant dense<0.000000e+00> : vector<8x128xf32>
    %19 = vector.multi_reduction <add>, %18, %cst_13 [0] : vector<2x8x128xf32> to vector<8x128xf32>
    %20 = arith.addf %16, %19 : vector<8x128xf32>
    %c0_14 = arith.constant 0 : index
    %c0_15 = arith.constant 0 : index
    %c0_16 = arith.constant 0 : index
    %c0_17 = arith.constant 0 : index
    %21 = vector.load %arg5[%c0_14, %c0_15, %c0_16, %c0_17] : memref<1x4x8x128xf32, #tpu.memory_space<vmem>>, vector<1x1x8x128xf32>
    %22 = vector.shape_cast %21 : vector<1x1x8x128xf32> to vector<8x128xf32>
    %23 = vector.shape_cast %20 : vector<8x128xf32> to vector<1x1x8x128xf32>
    tpu.vector_store %arg5[%c0_14, %c0_15, %c0_16, %c0_17], %23 {strides = array<i32>} : memref<1x4x8x128xf32, #tpu.memory_space<vmem>>, vector<1x1x8x128xf32>,
    %c0_18 = arith.constant 0 : index
    %c1 = arith.constant 1 : index
    %c0_19 = arith.constant 0 : index
    %c0_20 = arith.constant 0 : index
    %24 = vector.load %arg5[%c0_18, %c1, %c0_19, %c0_20] : memref<1x4x8x128xf32, #tpu.memory_space<vmem>>, vector<1x1x8x128xf32>
    %25 = vector.shape_cast %24 : vector<1x1x8x128xf32> to vector<8x128xf32>
    %26 = arith.mulf %7, %14 : vector<16x128xf32>
    %27 = vector.shape_cast %26 : vector<16x128xf32> to vector<2x8x128xf32>
    %cst_21 = arith.constant dense<0.000000e+00> : vector<8x128xf32>
    %28 = vector.multi_reduction <add>, %27, %cst_21 [0] : vector<2x8x128xf32> to vector<8x128xf32>
    %29 = arith.addf %25, %28 : vector<8x128xf32>
    %c0_22 = arith.constant 0 : index
    %c1_23 = arith.constant 1 : index
    %c0_24 = arith.constant 0 : index
    %c0_25 = arith.constant 0 : index
    %30 = vector.load %arg5[%c0_22, %c1_23, %c0_24, %c0_25] : memref<1x4x8x128xf32, #tpu.memory_space<vmem>>, vector<1x1x8x128xf32>
    %31 = vector.shape_cast %30 : vector<1x1x8x128xf32> to vector<8x128xf32>
    %32 = vector.shape_cast %29 : vector<8x128xf32> to vector<1x1x8x128xf32>
    tpu.vector_store %arg5[%c0_22, %c1_23, %c0_24, %c0_25], %32 {strides = array<i32>} : memref<1x4x8x128xf32, #tpu.memory_space<vmem>>, vector<1x1x8x128xf32>,
    %c0_26 = arith.constant 0 : index
    %c2 = arith.constant 2 : index
    %c0_27 = arith.constant 0 : index
    %c0_28 = arith.constant 0 : index
    %33 = vector.load %arg5[%c0_26, %c2, %c0_27, %c0_28] : memref<1x4x8x128xf32, #tpu.memory_space<vmem>>, vector<1x1x8x128xf32>
    %34 = vector.shape_cast %33 : vector<1x1x8x128xf32> to vector<8x128xf32>
    %35 = vector.shape_cast %5 : vector<16x128xf32> to vector<2x8x128xf32>
    %cst_29 = arith.constant dense<0.000000e+00> : vector<8x128xf32>
    %36 = vector.multi_reduction <add>, %35, %cst_29 [0] : vector<2x8x128xf32> to vector<8x128xf32>
    %37 = arith.addf %34, %36 : vector<8x128xf32>
    %c0_30 = arith.constant 0 : index
    %c2_31 = arith.constant 2 : index
    %c0_32 = arith.constant 0 : index
    %c0_33 = arith.constant 0 : index
    %38 = vector.load %arg5[%c0_30, %c2_31, %c0_32, %c0_33] : memref<1x4x8x128xf32, #tpu.memory_space<vmem>>, vector<1x1x8x128xf32>
    %39 = vector.shape_cast %38 : vector<1x1x8x128xf32> to vector<8x128xf32>
    %40 = vector.shape_cast %37 : vector<8x128xf32> to vector<1x1x8x128xf32>
    tpu.vector_store %arg5[%c0_30, %c2_31, %c0_32, %c0_33], %40 {strides = array<i32>} : memref<1x4x8x128xf32, #tpu.memory_space<vmem>>, vector<1x1x8x128xf32>,
    %c0_34 = arith.constant 0 : index
    %c3 = arith.constant 3 : index
    %c0_35 = arith.constant 0 : index
    %c0_36 = arith.constant 0 : index
    %41 = vector.load %arg5[%c0_34, %c3, %c0_35, %c0_36] : memref<1x4x8x128xf32, #tpu.memory_space<vmem>>, vector<1x1x8x128xf32>
    %42 = vector.shape_cast %41 : vector<1x1x8x128xf32> to vector<8x128xf32>
    %43 = vector.shape_cast %14 : vector<16x128xf32> to vector<2x8x128xf32>
    %cst_37 = arith.constant dense<0.000000e+00> : vector<8x128xf32>
    %44 = vector.multi_reduction <add>, %43, %cst_37 [0] : vector<2x8x128xf32> to vector<8x128xf32>
    %45 = arith.addf %42, %44 : vector<8x128xf32>
    %c0_38 = arith.constant 0 : index
    %c3_39 = arith.constant 3 : index
    %c0_40 = arith.constant 0 : index
    %c0_41 = arith.constant 0 : index
    %46 = vector.load %arg5[%c0_38, %c3_39, %c0_40, %c0_41] : memref<1x4x8x128xf32, #tpu.memory_space<vmem>>, vector<1x1x8x128xf32>
    %47 = vector.shape_cast %46 : vector<1x1x8x128xf32> to vector<8x128xf32>
    %48 = vector.shape_cast %45 : vector<8x128xf32> to vector<1x1x8x128xf32>
    tpu.vector_store %arg5[%c0_38, %c3_39, %c0_40, %c0_41], %48 {strides = array<i32>} : memref<1x4x8x128xf32, #tpu.memory_space<vmem>>, vector<1x1x8x128xf32>,
    return
  }
  func.func @transform_0(%arg0: i32, %arg1: i32) -> (i32, i32) {
    %c1_i32 = arith.constant 1 : i32
    %0 = arith.muli %arg0, %c1_i32 : i32
    %1 = arith.addi %0, %arg1 : i32
    %c0_i32 = arith.constant 0 : i32
    %c0_i32_0 = arith.constant 0 : i32
    return %1, %c0_i32 : i32, i32
  }
  func.func @transform_1(%arg0: i32, %arg1: i32) -> (i32, i32) {
    %c1_i32 = arith.constant 1 : i32
    %0 = arith.muli %arg0, %c1_i32 : i32
    %1 = arith.addi %0, %arg1 : i32
    %c0_i32 = arith.constant 0 : i32
    %c0_i32_0 = arith.constant 0 : i32
    return %1, %c0_i32 : i32, i32
  }
  func.func @transform_2(%arg0: i32, %arg1: i32) -> (i32, i32) {
    %c1_i32 = arith.constant 1 : i32
    %0 = arith.muli %arg0, %c1_i32 : i32
    %1 = arith.addi %0, %arg1 : i32
    %c0_i32 = arith.constant 0 : i32
    %c0_i32_0 = arith.constant 0 : i32
    return %1, %c0_i32 : i32, i32
  }
  func.func @transform_3(%arg0: i32, %arg1: i32) -> (i32, i32, i32, i32) {
    %c0_i32 = arith.constant 0 : i32
    %c0_i32_0 = arith.constant 0 : i32
    %c0_i32_1 = arith.constant 0 : i32
    %c0_i32_2 = arith.constant 0 : i32
    return %arg0, %c0_i32, %c0_i32_0, %c0_i32_1 : i32, i32, i32, i32
  }
}

</mosaic_0001>

<bundles_post_ra>
// kernel: tpu_custom_call.1
= control target key start
LH: loop header
LB: loop body
LE: loop exit
PB: predicated region body
PF: predicated region fallthrough
CT: control target
= control target key end

     0   :  { %s1077_s0 = inlined_call_operand.hbm [shape: f32[32,128], index: 0, kind: input, shape index: {}]   ;;  %s1078_s1 = inlined_call_operand.hbm [shape: f32[32,128], index: 1, kind: input, shape index: {}]   ;;  %s1079_s2 = inlined_call_operand.hbm [shape: f32[32,128], index: 2, kind: input, shape index: {}]   ;;  %s1080_s3 = inlined_call_operand.hbm [shape: f32[2,4,8,128], index: 3, kind: output, shape index: {}]  }
   0x1   :  { %1090 = sst [smem:[#allocation15_spill]] %s1078_s1 }
   0x2   :  { %8 = vsyncpa [#allocation3], 0 }
   0x3   :  { %10 = vsyncpa [#allocation3 + $0x1], 0 }
   0x4   :  { %11 = vsyncpa [#allocation6], 0 }
   0x5   :  { %13 = vsyncpa [#allocation6 + $0x1], 0 }
   0x6   :  { %14 = vsyncpa [#allocation4], 0 }
   0x7   :  { %16 = vsyncpa [#allocation4 + $0x1], 0  ;;  %s798_s12 = smov 0   ;;  %s800_s13 = smov 0  }
   0x8   :  { %s802_s14 = smov 0   ;;  %s804_s15 = smov 0  }
   0x9   :  { %s806_s16 = smov 0   ;;  %s808_s17 = smov 0  }
   0xa LB: > { %1091 = sst [smem:[#allocation12_spill]] %s763_s16  ;;  %s829_s18 = sadd.s32 4294967295, %s767_s17   ;;  %s767_s17 = sphi %s808_s17, %s22_s17   ;;  %s763_s16 = sphi %s806_s16, %s1114_s16   ;;  %s759_s15 = sphi %s804_s15, %s1113_s15   ;;  %s755_s14 = sphi %s802_s14, %s1117_s14   ;;  %s751_s13 = sphi %s800_s13, %s1116_s13   ;;  %s747_s12 = sphi %s798_s12, %s1115_s12  }
   0xb   : > { %s482_s19 = sadd.s32 4294967294, %s767_s17   ;;  %s34_s20 = sadd.s32 1, %s763_s16 }
   0xc   : > { %s43_s21 = sadd.s32 1, %s755_s14  ;;  %p36_p0 = scmp.ge.s32.totalorder %s34_s20, 2 }
   0xd   : > { %p50_p1 = scmp.ne.s32.totalorder %s755_s14, %s751_s13  ;;  %p51_p2 = scmp.eq.s32.totalorder %s767_s17, 0 }
   0xe   : > { %p56_p3 = scmp.ne.s32.totalorder %s751_s13, %s747_s12  ;;  %s1119_s20 = smov (%p36_p0, %s34_s20), 0 }
   0xf   : > { %1092 = sst [smem:[#allocation13_spill]] %s1119_s20  ;;  %p841_p4 = por %p51_p2, %p50_p1 }
  0x10   : > { %p57_p5 = scmp.eq.s32.totalorder %s829_s18, 0  ;;  %s40_s23 = ssub.s32 %s763_s16, %s1119_s20 }
  0x11   : > { %p136_p6 = scmp.eq.s32.totalorder %s829_s18, 1  ;;  %p41_p7 = scmp.eq.s32.totalorder %s40_s23, 0 }
  0x12   : > { %p849_p8 = por %p57_p5, %p56_p3  ;;  %p142_p10 = scmp.eq.s32.totalorder %s482_s19, 1 }
  0x13   : > { %p853_p9 = por %p136_p6, %p50_p1  ;;  %p536_p13 = scmp.lt.s32.totalorder %s767_s17, 2 }
  0x14   : > { %s1094_s24 = scalar_select %p849_p8, 1, 0 }
  0x15   : > { %s1095_s25 = scalar_select %p853_p9, 1, 0 }
  0x16   : > { %s858_s26 = scalar_select %p41_p7, %s755_s14, %s43_s21  }
  0x17   : > { %p860_p11 = por %p142_p10, %p56_p3  ;;  %s1083_s28 = sand.u32 1, %s755_s14  }
  0x18   : > { %1096 = sst [smem:[#allocation14_spill]] %s858_s26  ;;  %s869_s29 = sshll.u32 %s1083_s28, 4 }
  0x19   : > { %s1097_s27 = scalar_select %p860_p11, 1, 0 }
  0x1a   : > { %s872_s30 = sshll.u32 %s763_s16, 8  ;;  %p876_p0 = pnand %p536_p13, %p841_p4 }
  0x1b   : > { %s184_s5 = sand.u32 1, %s767_s17   ;;  %s1099_s1 = sld [smem:[#allocation15_spill]] }
  0x1c   : > { %s188_s9 = scalar_lea.vmem [#allocation5], %s869_s29  ;;  %s892_s11 = scalar_lea.sflag [#allocation6], %s184_s5 }
  0x1d   : > { %s196_s10 = sshll.u32 %s188_s9, 4  ;;  %p898_p4 = pneg %p876_p0  ;;  %s889_s10 = int_to_ptr.vmem [resolvable:$true] %s196_s10 }
  0x21   : > { %s885_s8 = scalar_lea.hbm %s1099_s1, %s872_s30  ;;  %s596_s6 = scalar_lea.hbm %s1099_s1, 512 }
  0x22   : > { %s591_s19 = scalar_lea.hbm %s885_s8, 256  ;;  %p597_p7 = scmp.lt.u32.totalorder %s885_s8, %s1099_s1 }
  0x23   : > { %p592_p3 = scmp.ne.s32.totalorder %s885_s8, %s591_s19  ;;  %p598_p10 = scmp.lt.u32.totalorder %s596_s6, %s591_s19 }
  0x24   : > { %p600_p12 = scmp.lt.u32.totalorder %s591_s19, %s885_s8 }
  0x25   : > { %p594_p5 = pnand %p898_p4, %p592_p3  ;;  %p599_p13 = por %p598_p10, %p597_p7 }
  0x27   : > { %p595_p6 = pneg %p594_p5  ;;  %p601_p1 = por %p600_p12, %p599_p13 }
  0x29   : > { %p602_p2 = pnand %p601_p1, %p595_p6 }
  0x2b   : > { %605 = shalt.err (!%p602_p2)
}
  0x2c   : > { %s606_s5 = scalar_lea.vmem %s889_s10, 256  ;;  %s769_s22 = smov [#allocation5]  }
  0x2d   : > { %p607_p3 = scmp.ne.s32.totalorder %s889_s10, %s606_s5  ;;  %s611_s23 = sshll.u32 %s769_s22, 4  ;;  %s612_s23 = int_to_ptr.vmem [resolvable:$false] %s611_s23 }
  0x2e   : > { %s613_s7 = scalar_lea.vmem %s612_s23, 512  ;;  %p614_p9 = scmp.lt.s32.totalorder %s889_s10, %s612_s23 }
  0x2f   : > { %p609_p5 = pnand %p607_p3, %p898_p4  ;;  %p615_p8 = scmp.lt.s32.totalorder %s613_s7, %s606_s5 }
  0x31   : > { %p610_p11 = pneg %p609_p5  ;;  %p616_p7 = por %p615_p8, %p614_p9 }
  0x33   : > { %p617_p10 = pnand %p616_p7, %p610_p11 }
  0x35   : > { %620 = shalt.err (!%p617_p10)
}
  0x36   : > { %s1084_s19 = smov 128   ;;  %s1086_s6 = smov 8  }
  0x37   : > { %528 = dma.hbm_to_vmem [thread:$0]  (!%p876_p0), %s885_s8, 256, %s889_s10, %s892_s11, %s1084_s19, %s1084_s19, %s1086_s6  }
  0x38   : > { %p1101_p8 = scmp.lt.s32.totalorder %s767_s17, 3  ;;  %p1102_p9 = scmp.ge.s32.totalorder %s767_s17, 1 }
  0x39   : > { %s937_s23 = scalar_lea.hbm %s1077_s0, %s872_s30  ;;  %s166_s7 = scalar_lea.vmem [#allocation2], %s869_s29 }
  0x3a   : > { %p929_p11 = pnand %p1102_p9, %p1101_p8  ;;  %s174_s28 = sshll.u32 %s166_s7, 4  ;;  %s940_s28 = int_to_ptr.vmem [resolvable:$true] %s174_s28 }
  0x3b   : > { %s946_s19 = scalar_lea.hbm %s1079_s2, %s872_s30  ;;  %s1104_s6 = sand.u32 1, %s755_s14  }
  0x3c   : > { %s1103_s9 = scalar_select %p929_p11, 1, 0 }
  0x3d   : > { %s950_s1 = scalar_lea.sflag [#allocation3], %s1104_s6  ;;  %s621_s20 = scalar_lea.hbm %s937_s23, 256 }
  0x3e   : > { %p622_p12 = scmp.ne.s32.totalorder %s937_s23, %s621_s20  ;;  %s626_s16 = scalar_lea.hbm %s1077_s0, 512 }
  0x3f   : > { %p627_p6 = scmp.lt.u32.totalorder %s937_s23, %s1077_s0  ;;  %p628_p13 = scmp.lt.u32.totalorder %s626_s16, %s621_s20 }
  0x40   : > { %p624_p1 = pnand %p622_p12, %p898_p4  ;;  %p630_p5 = scmp.lt.u32.totalorder %s621_s20, %s937_s23 }
  0x41   : > { %p629_p3 = por %p628_p13, %p627_p6 }
  0x42   : > { %p625_p2 = pneg %p624_p1 }
  0x43   : > { %p631_p7 = por %p630_p5, %p629_p3 }
  0x45   : > { %p632_p10 = pnand %p631_p7, %p625_p2 }
  0x47   : > { %635 = shalt.err (!%p632_p10)
}
  0x48   : > { %s636_s30 = scalar_lea.vmem %s940_s28, 256  ;;  %s772_s6 = smov [#allocation2]  }
  0x49   : > { %p637_p8 = scmp.ne.s32.totalorder %s940_s28, %s636_s30  ;;  %s641_s8 = sshll.u32 %s772_s6, 4  ;;  %s642_s8 = int_to_ptr.vmem [resolvable:$false] %s641_s8 }
  0x4a   : > { %s643_s26 = scalar_lea.vmem %s642_s8, 512  ;;  %p644_p1 = scmp.lt.s32.totalorder %s940_s28, %s642_s8 }
  0x4b   : > { %p639_p9 = pnand %p637_p8, %p898_p4  ;;  %p645_p11 = scmp.lt.s32.totalorder %s643_s26, %s636_s30 }
  0x4d   : > { %p640_p12 = pneg %p639_p9  ;;  %p646_p6 = por %p645_p11, %p644_p1 }
  0x4f   : > { %p647_p13 = pnand %p646_p6, %p640_p12 }
  0x51   : > { %650 = shalt.err (!%p647_p13)
}
  0x52   : > { %s1105_s16 = smov 8   ;;  %s1106_s20 = smov 128  }
  0x53   : > { %525 = dma.hbm_to_vmem [thread:$0]  (!%p876_p0), %s937_s23, 256, %s940_s28, %s950_s1, %s1106_s20, %s1106_s20, %s1105_s16  }
  0x54   : > { %s210_s10 = scalar_lea.vmem [#allocation7], %s869_s29  ;;  %s651_s22 = scalar_lea.hbm %s946_s19, 256 }
  0x55   : > { %s218_s5 = sshll.u32 %s210_s10, 4  ;;  %p652_p11 = scmp.ne.s32.totalorder %s946_s19, %s651_s22  ;;  %s978_s5 = int_to_ptr.vmem [resolvable:$true] %s218_s5 }
  0x56   : > { %s656_s6 = scalar_lea.hbm %s1079_s2, 512  ;;  %p657_p5 = scmp.lt.u32.totalorder %s946_s19, %s1079_s2 }
  0x57   : > { %p654_p2 = pnand %p652_p11, %p898_p4  ;;  %p658_p7 = scmp.lt.u32.totalorder %s656_s6, %s651_s22 }
  0x58   : > { %p660_p8 = scmp.lt.u32.totalorder %s651_s22, %s946_s19 }
  0x59   : > { %p655_p3 = pneg %p654_p2  ;;  %p659_p10 = por %p658_p7, %p657_p5 }
  0x5b   : > { %p661_p9 = por %p660_p8, %p659_p10 }
  0x5d   : > { %p662_p12 = pnand %p661_p9, %p655_p3 }
  0x5f   : > { %665 = shalt.err (!%p662_p12)
}
  0x60   : > { %s666_s1 = scalar_lea.vmem %s978_s5, 256  ;;  %s773_s28 = smov [#allocation7]  }
  0x61   : > { %p667_p1 = scmp.ne.s32.totalorder %s978_s5, %s666_s1  ;;  %s671_s29 = sshll.u32 %s773_s28, 4  ;;  %s672_s29 = int_to_ptr.vmem [resolvable:$false] %s671_s29 }
  0x62   : > { %s673_s23 = scalar_lea.vmem %s672_s29, 512  ;;  %p674_p11 = scmp.lt.s32.totalorder %s978_s5, %s672_s29 }
  0x63   : > { %p669_p6 = pnand %p667_p1, %p898_p4  ;;  %p675_p2 = scmp.lt.s32.totalorder %s673_s23, %s666_s1 }
  0x65   : > { %p670_p13 = pneg %p669_p6  ;;  %p676_p5 = por %p675_p2, %p674_p11 }
  0x67   : > { %p677_p7 = pnand %p676_p5, %p670_p13 }
  0x69   : > { %680 = shalt.err (!%p677_p7)
}
  0x6a   : > { %531 = dma.hbm_to_vmem [thread:$0]  (!%p876_p0), %s946_s19, 256, %s978_s5, %s892_s11, %s1106_s20, %s1106_s20, %s1105_s16  }
  0x6b   : > { %p1107_p4 = scmp.ne.s32.totalorder %s1103_s9, 0 }
  0x6c   : > { %s1008_s21 = sand.u32 (!%p1107_p4), 1, %s751_s13   ;;  %p1108_p3 = scmp.ne.s32.totalorder (!%p1107_p4), %s1094_s24, 0 }
  0x6d   : > { %230 = sbr.rel (%p1107_p4) target bundleno = 148 (0x94), region = 32  ;;  %s495_s10 = sshll.u32 (!%p1107_p4), %s1008_s21, 4 }
  0x6e   : > { %s233_s22 = scalar_lea.sflag (!%p1107_p4), [#allocation3], %s1008_s21  ;;  %s236_s7 = scalar_lea.vmem (!%p1107_p4), [#allocation2], %s495_s10 }
  0x74   : > { %734 = dma.done.wait (%p1108_p3), %s233_s22, 256  }
  0x75   : > { %736 = vsyncadd (%p1108_p3), %s233_s22, 4294967040  ;;  %s241_s4 = sand.u32 1, %s829_s18   ;;  %s245_s19 = scalar_lea.vmem [#allocation5], %s495_s10 }
  0x76   : > { %s242_s11 = scalar_lea.sflag [#allocation6], %s241_s4 }
  0x77   : > { %738 = dma.done.wait (%p1108_p3), %s242_s11, 512  }
  0x78   : > { %740 = vsyncadd (%p1108_p3), %s242_s11, 4294966784  ;;  %s498_s9 = sshll.u32 %s1008_s21, 5  ;;  %v301_v0 = vld [vmem:[%s236_s7] sm:$0xff]  ;;  %v302_v1 = vld [vmem:[%s236_s7 + $0x8] sm:$0xff]  ;;  %s254_s16 = scalar_lea.vmem [#allocation7], %s495_s10  ;;  %v774_v10 = vmov 0.0  }
  0x79   : > { %v303_v2 = vld [vmem:[%s245_s19] sm:$0xff]  ;;  %v304_v3 = vld [vmem:[%s245_s19 + $0x8] sm:$0xff]  ;;  %s286_s18 = scalar_lea.vmem [#allocation8], %s498_s9  ;;  %s513_s24 = sshll.u32 %s759_s15, 9 }
  0x7a   : > { %v305_v4 = vld [vmem:[%s254_s16] sm:$0xff]  ;;  %v306_v5 = vld [vmem:[%s254_s16 + $0x8] sm:$0xff]  ;;  %v307_v6 = vsub.f32 %v301_v0, %v303_v2  ;;  %v308_v7 = vsub.f32 %v302_v1, %v304_v3  ;;  %s354_s20 = sshll.u32 %s286_s18, 4  ;;  %s1026_s6 = scalar_lea.hbm %s1080_s3, %s513_s24  ;;  %s1028_s20 = int_to_ptr.vmem [resolvable:$true] %s354_s20 }
  0x7b   : > { %vm311_vm0 = vcmp.gt.f32.partialorder %v305_v4, 0.0  ;;  %vm312_vm1 = vcmp.gt.f32.partialorder %v306_v5, 0.0  ;;  %v332_v8 = vadd.f32 %v306_v5, %v305_v4  ;;  %s341_s8 = scalar_lea.sflag [#allocation4], %s1008_s21  ;;  %s681_s26 = scalar_lea.vmem %s1028_s20, 512 }
  0x7c   : > { %v309_v9 = vmul.f32 %v307_v6, %v307_v6  ;;  %v313_v11 = vsel %vm311_vm0, 1.0, %v774_v10  ;;  %v314_v12 = vsel %vm312_vm1, 1.0, %v774_v10  ;;  %v310_v13 = vmul.f32 %v308_v7, %v308_v7  ;;  %p682_p0 = scmp.ne.s32.totalorder %s1028_s20, %s681_s26  ;;  %p1109_p10 = scmp.ne.s32.totalorder %s1095_s25, 0 }
  0x7d   : > { %v315_v14 = vsub.f32 1.0, %v313_v11  ;;  %v316_v15 = vsub.f32 1.0, %v314_v12  ;;  %502 = vst [vmem:[%s286_s18 + $0x10] sm:$0xff] %v332_v8  ;;  %s775_s15 = smov [#allocation8]  }
  0x7e   : > { %v318_v16 = vmul.f32 %v309_v9, %v305_v4  ;;  %v319_v17 = vmul.f32 %v310_v13, %v306_v5  ;;  %p683_p8 = pnand %p682_p0, %p1109_p10  ;;  %s685_s1 = sshll.u32 %s775_s15, 4  ;;  %s686_s1 = int_to_ptr.vmem [resolvable:$false] %s685_s1 }
  0x7f   : > { %v325_v18 = vmul.f32 %v315_v14, %v309_v9  ;;  %v326_v19 = vmul.f32 %v316_v15, %v310_v13  ;;  %v337_v20 = vadd.f32 %v316_v15, %v315_v14  ;;  %s687_s28 = scalar_lea.vmem %s686_s1, 1024  ;;  %p688_p12 = scmp.lt.s32.totalorder %s1028_s20, %s686_s1 }
  0x80   : > { %v320_v21 = vadd.f32 %v319_v17, %v318_v16  ;;  %p684_p9 = pneg %p683_p8  ;;  %p689_p1 = scmp.lt.s32.totalorder %s687_s28, %s681_s26 }
  0x81   : > { %v327_v22 = vadd.f32 %v326_v19, %v325_v18  ;;  %504 = vst [vmem:[%s286_s18 + $0x18] sm:$0xff] %v337_v20 }
  0x82   : > { %322 = vst [vmem:[%s286_s18] sm:$0xff] %v320_v21  ;;  %p690_p6 = por %p689_p1, %p688_p12 }
  0x83   : > { %500 = vst [vmem:[%s286_s18 + $0x8] sm:$0xff] %v327_v22 }
  0x84   : > { %p691_p13 = pnand %p690_p6, %p684_p9 }
  0x86   : > { %694 = shalt.err (!%p691_p13)
}
  0x87   : > { %s695_s29 = scalar_lea.hbm %s1026_s6, 512  ;;  %s699_s22 = scalar_lea.hbm %s1080_s3, 1024 }
  0x88   : > { %p696_p11 = scmp.ne.s32.totalorder %s1026_s6, %s695_s29  ;;  %p700_p7 = scmp.lt.u32.totalorder %s1026_s6, %s1080_s3 }
  0x89   : > { %p701_p4 = scmp.lt.u32.totalorder %s699_s22, %s695_s29  ;;  %p703_p0 = scmp.lt.u32.totalorder %s695_s29, %s1026_s6 }
  0x8a   : > { %p697_p2 = pnand %p696_p11, %p1109_p10 }
  0x8b   : > { %p702_p3 = por %p701_p4, %p700_p7 }
  0x8c   : > { %p698_p5 = pneg %p697_p2 }
  0x8d   : > { %p704_p8 = por %p703_p0, %p702_p3 }
  0x8f   : > { %p705_p9 = pnand %p704_p8, %p698_p5 }
  0x91   : > { %708 = shalt.err (!%p705_p9)
}
  0x92   : > { %s776_s11 = smov 128   ;;  %s777_s19 = smov 8  }
  0x93   : > { %520 = dma.vmem_to_hbm [thread:$0]  (%p1109_p10), %s1028_s20, 512, %s1026_s6, %s341_s8, %s776_s11, %s776_s11, %s777_s19  }
  0x94 PF: > { %s369_s9 = sand.u32 1, %s747_s12   ;;  %p1110_p12 = scmp.ne.s32.totalorder %s1097_s27, 0 }
  0x95   : > { %p1111_p1 = scmp.ge.s32.totalorder %s767_s17, 2  ;;  %s370_s16 = scalar_lea.sflag [#allocation4], %s369_s9 }
  0x97   : > { %p533_p6 = pnand %p1111_p1, %p1110_p12 }
  0x99   : > { %742 = dma.done.wait (!%p533_p6), %s370_s16, 512  }
  0x9a   : > { %744 = vsyncadd (!%p533_p6), %s370_s16, 4294966784  ;;  %s22_s17 = sadd.s32 1, %s767_s17   ;;  %s1112_s18 = sld [smem:[#allocation14_spill]] }
  0x9b   : > { %p19_p13 = scmp.ge.s32.totalorder %s22_s17, 4   ;;  %s1113_s15 = sld [smem:[#allocation12_spill]] }
  0x9c   : > { %s1114_s16 = sld [smem:[#allocation13_spill]]  ;;  %s1115_s12 = smov %s751_s13 }
  0x9d   : > { %s1116_s13 = smov %s755_s14  ;;  %21 = sbr.rel (!%p19_p13) target bundleno = 10 (0xa), region = 108 }
  0xa0   : > { %s1117_s14 = smov %s1112_s18 }
  0xa4   :  { %375 = vsyncpa [#allocation3], 1 }
  0xa5   :  { %377 = vsyncpa [#allocation3 + $0x1], 1 }
  0xa6   :  { %378 = vsyncpa [#allocation6], 1 }
  0xa7   :  { %380 = vsyncpa [#allocation6 + $0x1], 1 }
  0xa8   :  { %381 = vsyncpa [#allocation4], 1 }
  0xa9   :  { %383 = vsyncpa [#allocation4 + $0x1], 1 }

</bundles_post_ra>
